<compile_context>
chip_gen: v5e
topology: v5e:2x2
jax: 0.10.0
libtpu: 0.0.40
codegen_flags: <defaults>
</compile_context>

<pallas_src>
import functools

import jax
import jax.numpy as jnp
from jax.experimental import pallas as pl
from jax.experimental.pallas import tpu as pltpu


def _round_up(x, m):
    return (x + m - 1) // m * m


def _vq_kernel(n_valid, x_ref, e_ref, et_ref, esq_ref,
               q_ref, enc_ref, counts_ref, sqerr_ref):
    """One (TN, D) tile of input rows against the full (K, D) codebook."""
    x = x_ref[...].astype(jnp.float32)            # (TN, D)
    e = e_ref[...]                                # (K, D)  f32 (cast in wrapper)
    e_t = et_ref[...]                             # (D, K)  f32
    e_sq = esq_ref[...]                           # (1, K)  f32
    TN, _ = x.shape
    K = e.shape[0]

    # Distances used only for argmin: |e|^2 - 2 x.e^T.  The |x|^2 term is
    # constant per row, so it cannot change the argmin; dropping it removes an
    # XLU row-reduction over D and a broadcast-add per tile.
    dots = jnp.dot(x, e_t, preferred_element_type=jnp.float32)    # (TN, K) MXU
    dist = e_sq - 2.0 * dots                                      # (TN, K)

    # argmin along K with first-index tie-break (no argmin lowering needed).
    min_d = jnp.min(dist, axis=1, keepdims=True)                  # (TN, 1)
    col = jax.lax.broadcasted_iota(jnp.int32, (TN, K), 1)         # (TN, K)
    idx = jnp.min(jnp.where(dist == min_d, col, K), axis=1, keepdims=True)

    # One-hot encodings (K is lane-dense for K >= 128).
    enc = (col == idx).astype(jnp.float32)                        # (TN, K)
    enc_ref[...] = enc

    # quantized = encodings @ codebook (MXU), stored in the input dtype.
    quant = jnp.dot(enc, e, preferred_element_type=jnp.float32)   # (TN, D)
    q_ref[...] = quant.astype(q_ref.dtype)

    # Row-validity mask: padded tail rows contribute nothing to the stats.
    row = pl.program_id(0) * TN + jax.lax.broadcasted_iota(jnp.int32, (TN, 1), 0)
    valid = (row < n_valid).astype(jnp.float32)                   # (TN, 1)

    # Per-tile partial sums, reduced in the wrapper (keeps this grid axis
    # "parallel" -> megacore-friendly, no cross-iteration scratch state).
    diff = (quant - x) * valid
    sqerr_ref[...] = jnp.full(sqerr_ref.shape, jnp.sum(diff * diff), jnp.float32)
    counts_ref[...] = jnp.sum(enc * valid, axis=0, keepdims=True)[None]


def vector_quantizer_forward(inputs, embedding, commitment_cost, *, tile_n=512):
    """inputs: (..., D), embedding: (K, D). Returns (loss, quantized, perplexity, encodings)."""
    input_shape = inputs.shape
    K, D = embedding.shape
    flat = inputs.reshape(-1, D)
    N = flat.shape[0]

    # ---- choose the N-tile: largest requested size that fits the VMEM budget.
    # Budget is conservative for v7x (64 MiB physical / 32 MiB scoped VMEM);
    # v5e/v6e have more headroom but the same tile works fine there.
    TN = min(_round_up(tile_n, 8), _round_up(N, 8))
    vmem_budget = 20 * 1024 * 1024
    while TN > 8:
        est = 4 * (2 * TN * (2 * D + K)      # x, q, enc tiles (double-buffered)
                   + 2 * TN * K              # dist + one-hot intermediates
                   + 2 * K * D + K + 128)    # resident e, e^T, |e|^2, partials
        if est <= vmem_budget:
            break
        TN = _round_up(TN // 2, 8)
    TN = max(TN, 8)

    N_pad = _round_up(N, TN)
    num_tiles = N_pad // TN
    if N_pad != N:
        flat = jnp.pad(flat, ((0, N_pad - N), (0, 0)))

    # ---- hoist all codebook-derived work out of the per-tile body.
    e32 = embedding.astype(jnp.float32)
    e_t = e32.T                                   # (D, K)
    e_sq = jnp.sum(e32 * e32, axis=1)[None, :]    # (1, K)

    kernel = functools.partial(_vq_kernel, N)

    quant_pad, enc_pad, counts, sqerr = pl.pallas_call(
        kernel,
        grid=(num_tiles,),
        in_specs=[
            pl.BlockSpec((TN, D), lambda i: (i, 0)),        # x tile
            pl.BlockSpec((K, D), lambda i: (0, 0)),         # codebook (resident)
            pl.BlockSpec((D, K), lambda i: (0, 0)),         # codebook^T (resident)
            pl.BlockSpec((1, K), lambda i: (0, 0)),         # |e|^2 (resident)
        ],
        out_specs=(
            pl.BlockSpec((TN, D), lambda i: (i, 0)),        # quantized tile
            pl.BlockSpec((TN, K), lambda i: (i, 0)),        # encodings tile
            pl.BlockSpec((1, 1, K), lambda i: (i, 0, 0)),   # per-tile code counts
            pl.BlockSpec((1, 1, 128), lambda i: (i, 0, 0)), # per-tile sq-err sum
        ),
        out_shape=(
            jax.ShapeDtypeStruct((N_pad, D), inputs.dtype),
            jax.ShapeDtypeStruct((N_pad, K), jnp.float32),
            jax.ShapeDtypeStruct((num_tiles, 1, K), jnp.float32),
            jax.ShapeDtypeStruct((num_tiles, 1, 128), jnp.float32),
        ),
        compiler_params=pltpu.CompilerParams(
            dimension_semantics=("parallel",),
            vmem_limit_bytes=32 * 1024 * 1024,
        ),
    )(flat, e32, e_t, e_sq)

    quantized = quant_pad[:N].reshape(input_shape)
    encodings = enc_pad[:N]

    # ---- trivial cross-tile reductions (kept outside the kernel by design so
    # the grid axis stays "parallel" for megacore sharding).
    total_sq = jnp.sum(sqerr[:, 0, 0])
    mse = total_sq / jnp.float32(N * D)
    loss = (1.0 + commitment_cost) * mse

    avg_probs = jnp.sum(counts[:, 0, :], axis=0) / jnp.float32(N)
    perplexity = jnp.exp(-jnp.sum(avg_probs * jnp.log(avg_probs + 1e-10)))

    return loss, quantized, perplexity, encodings


def _reference(inputs, embedding, commitment_cost):
    """Pure-JAX reference mirroring the PyTorch forward."""
    D = embedding.shape[1]
    flat = inputs.reshape(-1, D)
    dist = (jnp.sum(flat ** 2, axis=1, keepdims=True)
            + jnp.sum(embedding ** 2, axis=1)
            - 2.0 * flat @ embedding.T)
    idx = jnp.argmin(dist, axis=1)
    enc = jax.nn.one_hot(idx, embedding.shape[0], dtype=jnp.float32)
    quant = (enc @ embedding).reshape(inputs.shape)
    mse = jnp.mean((quant - inputs) ** 2)
    loss = (1.0 + commitment_cost) * mse
    avg_probs = jnp.mean(enc, axis=0)
    perplexity = jnp.exp(-jnp.sum(avg_probs * jnp.log(avg_probs + 1e-10)))
    return loss, quant, perplexity, enc


if __name__ == "__main__":
    num_embeddings = 128     # K
    embedding_dim = 32       # D
    commitment_cost = 0.25

    key = jax.random.PRNGKey(0)
    k_emb, k_x = jax.random.split(key)

    # nn.Embedding weight init: uniform(-1/K, 1/K)
    embedding = jax.random.uniform(
        k_emb, (num_embeddings, embedding_dim), jnp.float32,
        minval=-1.0 / num_embeddings, maxval=1.0 / num_embeddings)

    # (B, L, D) channels-last.  B*L = 200 is deliberately NOT a multiple of
    # the tile so the padded-tail masking path is exercised (tile_n=64 -> 4
    # grid steps, last tile only partially valid).
    x = jax.random.normal(k_x, (2, 100, embedding_dim), jnp.float32) * 0.05

    loss, quantized, perplexity, encodings = vector_quantizer_forward(
        x, embedding, commitment_cost, tile_n=64)
    jax.block_until_ready((loss, quantized, perplexity, encodings))

    # sanity check against pure-JAX reference
    ref_loss, ref_q, ref_p, ref_e = _reference(x, embedding, commitment_cost)
    assert jnp.allclose(loss, ref_loss, rtol=1e-5, atol=1e-6), (loss, ref_loss)
    assert jnp.allclose(quantized, ref_q, rtol=1e-5, atol=1e-6)
    assert jnp.allclose(perplexity, ref_p, rtol=1e-5, atol=1e-5)
    assert jnp.array_equal(encodings, ref_e)

    print("KERNEL_OK")
</pallas_src>

<mosaic_0001>
module attributes {stable_mosaic.version = 11 : i64} {
  func.func @_vq_kernel(%arg0: i32, %arg1: memref<64x32xf32, #tpu.memory_space<vmem>>, %arg2: memref<128x32xf32, #tpu.memory_space<vmem>>, %arg3: memref<32x128xf32, #tpu.memory_space<vmem>>, %arg4: memref<1x128xf32, #tpu.memory_space<vmem>>, %arg5: memref<64x32xf32, #tpu.memory_space<vmem>>, %arg6: memref<64x128xf32, #tpu.memory_space<vmem>>, %arg7: memref<1x1x128xf32, #tpu.memory_space<vmem>>, %arg8: memref<1x1x128xf32, #tpu.memory_space<vmem>>) attributes {dimension_semantics = [#tpu.dimension_semantics<parallel>], iteration_bounds = array<i64: 4>, scalar_prefetch = 0 : i64, scratch_operands = 0 : i64, tpu.core_type = #tpu.core_type<tc>, window_params = [{transform_indices = @transform_0, window_bounds = array<i64: 64, 32>}, {pipeline_mode = #tpu.pipeline_mode<synchronous>, transform_indices = @transform_1, window_bounds = array<i64: 128, 32>}, {pipeline_mode = #tpu.pipeline_mode<synchronous>, transform_indices = @transform_2, window_bounds = array<i64: 32, 128>}, {pipeline_mode = #tpu.pipeline_mode<synchronous>, transform_indices = @transform_3, window_bounds = array<i64: 1, 128>}, {transform_indices = @transform_4, window_bounds = array<i64: 64, 32>}, {transform_indices = @transform_5, window_bounds = array<i64: 64, 128>}, {transform_indices = @transform_6, window_bounds = array<i64: 1, 1, 128>}, {transform_indices = @transform_7, window_bounds = array<i64: 1, 1, 128>}]} {
    %c0 = arith.constant 0 : index
    %c0_0 = arith.constant 0 : index
    %0 = vector.load %arg1[%c0, %c0_0] : memref<64x32xf32, #tpu.memory_space<vmem>>, vector<64x32xf32>
    %c0_1 = arith.constant 0 : index
    %c0_2 = arith.constant 0 : index
    %1 = vector.load %arg2[%c0_1, %c0_2] : memref<128x32xf32, #tpu.memory_space<vmem>>, vector<128x32xf32>
    %c0_3 = arith.constant 0 : index
    %c0_4 = arith.constant 0 : index
    %2 = vector.load %arg3[%c0_3, %c0_4] : memref<32x128xf32, #tpu.memory_space<vmem>>, vector<32x128xf32>
    %c0_5 = arith.constant 0 : index
    %c0_6 = arith.constant 0 : index
    %3 = vector.load %arg4[%c0_5, %c0_6] : memref<1x128xf32, #tpu.memory_space<vmem>>, vector<1x128xf32>
    %cst = arith.constant dense<0.000000e+00> : vector<64x128xf32>
    %4 = tpu.matmul %0, %2, %cst {dimension_numbers = #tpu.dot_dimension_numbers<[1], [0], [0], [1], [0, 0, 1, 1], [], []>} : vector<64x32xf32>, vector<32x128xf32>, vector<64x128xf32> -> vector<64x128xf32>
    %cst_7 = arith.constant 2.000000e+00 : f32
    %5 = vector.broadcast %cst_7 : f32 to vector<64x128xf32>
    %6 = arith.mulf %5, %4 : vector<64x128xf32>
    %7 = vector.broadcast %3 : vector<1x128xf32> to vector<64x128xf32>
    %8 = arith.subf %7, %6 : vector<64x128xf32>
    %cst_8 = arith.constant dense<0x7F800000> : vector<64xf32>
    %9 = vector.multi_reduction <minimumf>, %8, %cst_8 [1] : vector<64x128xf32> to vector<64xf32>
    %10 = vector.shape_cast %9 : vector<64xf32> to vector<64x1xf32>
    %11 = tpu.iota {dimensions = array<i32: 1>} : vector<64x128xi32>
    %12 = vector.broadcast %10 : vector<64x1xf32> to vector<64x128xf32>
    %13 = arith.cmpf oeq, %8, %12 : vector<64x128xf32>
    %c128_i32 = arith.constant 128 : i32
    %14 = vector.broadcast %c128_i32 : i32 to vector<64x128xi32>
    %15 = arith.select %13, %11, %14 : vector<64x128xi1>, vector<64x128xi32>
    %cst_9 = arith.constant dense<2147483647> : vector<64xi32>
    %16 = vector.multi_reduction <minsi>, %15, %cst_9 [1] : vector<64x128xi32> to vector<64xi32>
    %17 = vector.shape_cast %16 : vector<64xi32> to vector<64x1xi32>
    %18 = vector.broadcast %17 : vector<64x1xi32> to vector<64x128xi32>
    %19 = arith.cmpi eq, %11, %18 : vector<64x128xi32>
    %20 = arith.extui %19 : vector<64x128xi1> to vector<64x128xi32>
    %21 = arith.sitofp %20 : vector<64x128xi32> to vector<64x128xf32>
    %c0_10 = arith.constant 0 : index
    %c0_11 = arith.constant 0 : index
    %22 = vector.load %arg6[%c0_10, %c0_11] : memref<64x128xf32, #tpu.memory_space<vmem>>, vector<64x128xf32>
    tpu.vector_store %arg6[%c0_10, %c0_11], %21 {strides = array<i32>} : memref<64x128xf32, #tpu.memory_space<vmem>>, vector<64x128xf32>,
    %cst_12 = arith.constant dense<0.000000e+00> : vector<64x32xf32>
    %23 = tpu.matmul %21, %1, %cst_12 {dimension_numbers = #tpu.dot_dimension_numbers<[1], [0], [0], [1], [0, 0, 1, 1], [], []>} : vector<64x128xf32>, vector<128x32xf32>, vector<64x32xf32> -> vector<64x32xf32>
    %c0_13 = arith.constant 0 : index
    %c0_14 = arith.constant 0 : index
    %24 = vector.load %arg5[%c0_13, %c0_14] : memref<64x32xf32, #tpu.memory_space<vmem>>, vector<64x32xf32>
    tpu.vector_store %arg5[%c0_13, %c0_14], %23 {strides = array<i32>} : memref<64x32xf32, #tpu.memory_space<vmem>>, vector<64x32xf32>,
    %c64_i32 = arith.constant 64 : i32
    %25 = arith.muli %arg0, %c64_i32 : i32
    %26 = tpu.iota {dimensions = array<i32: 0>} : vector<64x1xi32>
    %27 = vector.broadcast %25 : i32 to vector<64x1xi32>
    %28 = arith.addi %27, %26 : vector<64x1xi32>
    %c200_i32 = arith.constant 200 : i32
    %29 = vector.broadcast %c200_i32 : i32 to vector<64x1xi32>
    %30 = arith.cmpi slt, %28, %29 : vector<64x1xi32>
    %31 = arith.extui %30 : vector<64x1xi1> to vector<64x1xi32>
    %32 = arith.sitofp %31 : vector<64x1xi32> to vector<64x1xf32>
    %33 = arith.subf %23, %0 : vector<64x32xf32>
    %34 = vector.broadcast %32 : vector<64x1xf32> to vector<64x32xf32>
    %35 = arith.mulf %33, %34 : vector<64x32xf32>
    %36 = arith.mulf %35, %35 : vector<64x32xf32>
    %37 = vector.shape_cast %36 : vector<64x32xf32> to vector<1x64x32xf32>
    %cst_15 = arith.constant dense<0.000000e+00> : vector<1xf32>
    %38 = vector.multi_reduction <add>, %37, %cst_15 [1, 2] : vector<1x64x32xf32> to vector<1xf32>
    %39 = vector.shape_cast %38 : vector<1xf32> to vector<1x1x1xf32>
    %40 = vector.extract %39[0, 0, 0] : f32 from vector<1x1x1xf32>
    %41 = vector.broadcast %40 : f32 to vector<1x1x128xf32>
    %c0_16 = arith.constant 0 : index
    %c0_17 = arith.constant 0 : index
    %c0_18 = arith.constant 0 : index
    %42 = vector.load %arg8[%c0_16, %c0_17, %c0_18] : memref<1x1x128xf32, #tpu.memory_space<vmem>>, vector<1x1x128xf32>
    tpu.vector_store %arg8[%c0_16, %c0_17, %c0_18], %41 {strides = array<i32>} : memref<1x1x128xf32, #tpu.memory_space<vmem>>, vector<1x1x128xf32>,
    %43 = vector.broadcast %32 : vector<64x1xf32> to vector<64x128xf32>
    %44 = arith.mulf %21, %43 : vector<64x128xf32>
    %cst_19 = arith.constant dense<0.000000e+00> : vector<128xf32>
    %45 = vector.multi_reduction <add>, %44, %cst_19 [0] : vector<64x128xf32> to vector<128xf32>
    %46 = vector.shape_cast %45 : vector<128xf32> to vector<1x128xf32>
    %47 = vector.shape_cast %46 : vector<1x128xf32> to vector<1x1x128xf32>
    %c0_20 = arith.constant 0 : index
    %c0_21 = arith.constant 0 : index
    %c0_22 = arith.constant 0 : index
    %48 = vector.load %arg7[%c0_20, %c0_21, %c0_22] : memref<1x1x128xf32, #tpu.memory_space<vmem>>, vector<1x1x128xf32>
    tpu.vector_store %arg7[%c0_20, %c0_21, %c0_22], %47 {strides = array<i32>} : memref<1x1x128xf32, #tpu.memory_space<vmem>>, vector<1x1x128xf32>,
    return
  }
  func.func @transform_0(%arg0: i32) -> (i32, i32) {
    %c0_i32 = arith.constant 0 : i32
    %c0_i32_0 = arith.constant 0 : i32
    return %arg0, %c0_i32 : i32, i32
  }
  func.func @transform_1(%arg0: i32) -> (i32, i32) {
    %c0_i32 = arith.constant 0 : i32
    %c0_i32_0 = arith.constant 0 : i32
    %c0_i32_1 = arith.constant 0 : i32
    return %c0_i32, %c0_i32_0 : i32, i32
  }
  func.func @transform_2(%arg0: i32) -> (i32, i32) {
    %c0_i32 = arith.constant 0 : i32
    %c0_i32_0 = arith.constant 0 : i32
    %c0_i32_1 = arith.constant 0 : i32
    return %c0_i32, %c0_i32_0 : i32, i32
  }
  func.func @transform_3(%arg0: i32) -> (i32, i32) {
    %c0_i32 = arith.constant 0 : i32
    %c0_i32_0 = arith.constant 0 : i32
    %c0_i32_1 = arith.constant 0 : i32
    return %c0_i32, %c0_i32_0 : i32, i32
  }
  func.func @transform_4(%arg0: i32) -> (i32, i32) {
    %c0_i32 = arith.constant 0 : i32
    %c0_i32_0 = arith.constant 0 : i32
    return %arg0, %c0_i32 : i32, i32
  }
  func.func @transform_5(%arg0: i32) -> (i32, i32) {
    %c0_i32 = arith.constant 0 : i32
    %c0_i32_0 = arith.constant 0 : i32
    return %arg0, %c0_i32 : i32, i32
  }
  func.func @transform_6(%arg0: i32) -> (i32, i32, i32) {
    %c0_i32 = arith.constant 0 : i32
    %c0_i32_0 = arith.constant 0 : i32
    %c0_i32_1 = arith.constant 0 : i32
    return %arg0, %c0_i32, %c0_i32_0 : i32, i32, i32
  }
  func.func @transform_7(%arg0: i32) -> (i32, i32, i32) {
    %c0_i32 = arith.constant 0 : i32
    %c0_i32_0 = arith.constant 0 : i32
    %c0_i32_1 = arith.constant 0 : i32
    return %arg0, %c0_i32, %c0_i32_0 : i32, i32, i32
  }
}

</mosaic_0001>

<bundles_post_ra>
// kernel: tpu_custom_call.1
= control target key start
LH: loop header
LB: loop body
LE: loop exit
PB: predicated region body
PF: predicated region fallthrough
CT: control target
= control target key end

     0   :  { %s1724_s0 = inlined_call_operand.vmem [shape: f32[256,32], index: 0, kind: input, shape index: {}]   ;;  %s1725_s1 = inlined_call_operand.vmem [shape: f32[128,32], index: 1, kind: input, shape index: {}]   ;;  %s1726_s2 = inlined_call_operand.vmem [shape: f32[32,128], index: 2, kind: input, shape index: {}]   ;;  %s1727_s3 = inlined_call_operand.vmem [shape: f32[1,128], index: 3, kind: input, shape index: {}]   ;;  %s1728_s4 = inlined_call_operand.vmem [shape: f32[256,32], index: 4, kind: output, shape index: {0}]   ;;  %s1729_s5 = inlined_call_operand.hbm [shape: f32[256,128], index: 5, kind: output, shape index: {1}]   ;;  %s1730_s6 = inlined_call_operand.hbm [shape: f32[4,1,128], index: 6, kind: output, shape index: {2}]   ;;  %s1731_s7 = inlined_call_operand.hbm [shape: f32[4,1,128], index: 7, kind: output, shape index: {3}]  }
   0x1   :  { %1733 = sst [smem:[#allocation9_spill]] %s1724_s0 }
   0x2   :  { %1734 = sst [smem:[#allocation10_spill]] %s1725_s1 }
   0x3   :  { %13 = vsyncpa [#allocation3], 0 }
   0x4   :  { %15 = vsyncpa [#allocation3 + $0x1], 0 }
   0x5   :  { %16 = vsyncpa [#allocation5], 0 }
   0x6   :  { %18 = vsyncpa [#allocation5 + $0x1], 0  ;;  %s1272_s24 = smov 0   ;;  %s1274_s25 = smov 0  }
   0x7   :  { %s1276_s26 = smov 0   ;;  %s1278_s27 = smov 0  }
   0x8 LB: > { %s1293_s28 = sadd.s32 4294967295, %s1226_s27   ;;  %s1732_s29 = sadd.s32 4294967294, %s1226_s27   ;;  %s1226_s27 = sphi %s1278_s27, %s1743_s27   ;;  %s1222_s26 = sphi %s1276_s26, %s1742_s26   ;;  %s1218_s25 = sphi %s1274_s25, %s1741_s25   ;;  %s1214_s24 = sphi %s1272_s24, %s1740_s24  }
   0x9   : > { %s1297_s30 = sadd.s32 1, %s1226_s27   ;;  %s146_s8 = sadd.s32 1, %s1222_s26 }
   0xa   : > { %s143_s9 = ssub.s32 %s1226_s27, %s1297_s30  ;;  %p156_p0 = scmp.ne.s32.totalorder %s1222_s26, %s1218_s25 }
   0xb   : > { %p144_p1 = scmp.eq.s32.totalorder %s143_s9, 0  ;;  %p157_p2 = scmp.eq.s32.totalorder %s1293_s28, 3 }
   0xc   : > { %p162_p3 = scmp.ne.s32.totalorder %s1218_s25, %s1214_s24  ;;  %p163_p4 = scmp.eq.s32.totalorder %s1732_s29, 3 }
   0xd   : > { %s1310_s10 = scalar_select %p144_p1, %s1222_s26, %s146_s8  }
   0xe   : > { %p1312_p5 = por %p157_p2, %p156_p0  ;;  %p1316_p6 = por %p163_p4, %p162_p3 }
   0xf   : > { %p967_p7 = scmp.ge.s32.totalorder %s1226_s27, 1  ;;  %p251_p8 = scmp.lt.s32.totalorder %s1226_s27, 5 }
  0x11   : > { %p252_p9 = pnand %p967_p7, %p251_p8 }
  0x12   : > { %s969_s17 = sshll.u32 (!%p252_p9), %s1293_s28, 3  ;;  %s1737_s0 = sld [smem:[#allocation9_spill]] (!%p252_p9) }
  0x13   : > { %255 = sbr.rel (%p252_p9) target bundleno = 890 (0x37a), region = 36  ;;  %p297_p10 = scmp.lt.s32.totalorder (!%p252_p9), %s969_s17, 31 }
  0x14   : > { %s1738_s1 = sld [smem:[#allocation10_spill]] (!%p252_p9)  ;;  %s1503_s14 = sand.u32 (!%p252_p9), 1, %s1218_s25  }
  0x15   : > { %s997_s15 = sshll.u32 (!%p252_p9), %s1293_s28, 6  ;;  %s968_s16 = sshll.u32 (!%p252_p9), %s1503_s14, 6 }
  0x16   : > { %s1522_s18 = scalar_lea.vmem (!%p252_p9), [#allocation2], %s968_s16  ;;  %s289_s19 = scalar_lea.vmem (!%p252_p9), [#allocation4], %s1503_s14 }
  0x17   : > { %s794_s8 = scalar_lea.hbm (!%p252_p9), %s1729_s5, %s997_s15  ;;  %s809_s20 = scalar_lea.hbm (!%p252_p9), %s1730_s6, %s1293_s28 }
  0x18   : > { %v336_v0 = vld [vmem:[%s1726_s2 + $0x18] sm:$0xff]  ;;  %v335_v1 = vld [vmem:[%s1726_s2 + $0x10] sm:$0xff]  ;;  %v334_v2 = vld [vmem:[%s1726_s2 + $0x8] sm:$0xff]  ;;  %s1745_s17 = smov (!%p297_p10, %s969_s17), 31  ;;  %vm338_vm0 = vcmask 261120   ;;  %v439_v37 = vlaneseq  ;;  %s775_s21 = sand.u32 1, %s1293_s28  }
  0x19   : > { %375 = vmatpush.msra.mxu0 %v336_v0  ;;  %1012 = vmatpush.msra.mxu3 %v336_v0  ;;  %v333_v3 = vld [vmem:[%s1726_s2] sm:$0xff]  ;;  %s970_s22 = sshll.u32 %s1745_s17, 3  ;;  %s813_s29 = sshll.u32 %s809_s20, 4  ;;  %s814_s29 = int_to_ptr.hbm [resolvable:$true] %s813_s29 }
  0x1a   : > { %s300_s9 = scalar_lea.vmem %s1737_s0, %s970_s22  ;;  %v1103_v12 = vld [vmem:[%s1727_s3] ss:$0 sm:$0xff]  ;;  %v1379_v38 = vand.u32 127, %v439_v37  ;;  %s1605_s23 = scalar_lea.vmem %s1728_s4, %s970_s22 }
  0x1b   : > { %376 = vmatpush.msra.mxu0 %v335_v1  ;;  %1013 = vmatpush.msra.mxu3 %v335_v1  ;;  %v1343_v4 = vld [vmem:[%s300_s9] sm:$0xff]  ;;  %v1345_v5 = vld [vmem:[%s300_s9 + $0x30] sm:$0xff]  ;;  %v1351_v6 = vld [vmem:[%s300_s9 + $0x8] sm:$0xff]  ;;  %s795_s0 = sshll.u32 %s1522_s18, 4  ;;  %s1660_s0 = int_to_ptr.vmem [resolvable:$true] %s795_s0 }
  0x1c   : > { %v1353_v7 = vld [vmem:[%s300_s9 + $0x38] sm:$0xff]  ;;  %v1359_v8 = vld [vmem:[%s300_s9 + $0x10] sm:$0xff]  ;;  %v1367_v10 = vld [vmem:[%s300_s9 + $0x20] sm:$0xff] }
  0x1d   : > { %377 = vmatpush.msra.mxu0 %v334_v2  ;;  %1014 = vmatpush.msra.mxu3 %v334_v2  ;;  %v1363_v9 = vld [vmem:[%s300_s9 + $0x18] sm:$0xff]  ;;  %v1371_v11 = vld [vmem:[%s300_s9 + $0x28] sm:$0xff]  ;;  %s797_s9 = sshll.u32 %s794_s8, 4  ;;  %s1657_s9 = int_to_ptr.hbm [resolvable:$true] %s797_s9 }
  0x1f   : > { %378 = vmatpush.msra.mxu0 %v333_v3  ;;  %1015 = vmatpush.msra.mxu3 %v333_v3 }
  0x20   : > { %973 = vmatmul.msk.f32.vlgmr.msra.gmra.mxu0 %vm338_vm0, %v1343_v4  ;;  %979 = vmatmul.msk.f32.vlgmr.msra.gmra.mxu3 %vm338_vm0, %v1345_v5 }
  0x28   : > { %974 = vmatmul.msk.f32.gmra.mxu0 %vm338_vm0, %v1351_v6  ;;  %980 = vmatmul.msk.f32.gmra.mxu3 %vm338_vm0, %v1353_v7 }
  0x30   : > { %975 = vmatmul.msk.f32.gmra.mxu0 %vm338_vm0, %v1359_v8 }
  0x38   : > { %976 = vmatmul.msk.f32.gmra.mxu0 %vm338_vm0, %v1363_v9 }
  0x40   : > { %977 = vmatmul.msk.f32.gmra.mxu0 %vm338_vm0, %v1367_v10 }
  0x48   : > { %978 = vmatmul.msk.f32.gmra.mxu0 %vm338_vm0, %v1371_v11 }
  0x9d   : > { %v380_v13 = vpop.f32.mrf.mxu0 }
  0x9e   : > { %v404_v14 = vmul.f32 2.0, %v380_v13 }
  0xa0   : > { %v415_v15 = vsub.f32 %v1103_v12, %v404_v14 }
  0xa2   : > { %423 = vmin.xlane.f32.xlu0 %v415_v15 }
  0xa3   : > { %v398_v16 = vpop.f32.mrf.mxu3 }
  0xa4   : > { %v410_v17 = vmul.f32 2.0, %v398_v16 }
  0xa5   : > { %v383_v18 = vpop.f32.mrf.mxu0 }
  0xa6   : > { %v405_v19 = vmul.f32 2.0, %v383_v18  ;;  %v421_v20 = vsub.f32 %v1103_v12, %v410_v17 }
  0xa8   : > { %435 = vmin.xlane.f32.xlu2 %v421_v20  ;;  %v416_v21 = vsub.f32 %v1103_v12, %v405_v19 }
  0xaa   : > { %425 = vmin.xlane.f32.xlu1 %v416_v21 }
  0xab   : > { %v401_v30 = vpop.f32.mrf.mxu3 }
  0xac   : > { %v411_v32 = vmul.f32 2.0, %v401_v30  ;;  %v328_v30 = vld [vmem:[%s1738_s1 + $0x58] sm:$0xff] }
  0xad   : > { %v386_v22 = vpop.f32.mrf.mxu0 }
  0xae   : > { %v406_v23 = vmul.f32 2.0, %v386_v22  ;;  %v422_v35 = vsub.f32 %v1103_v12, %v411_v32  ;;  %v327_v32 = vld [vmem:[%s1738_s1 + $0x50] sm:$0xff] }
  0xb0   : > { %v417_v24 = vsub.f32 %v1103_v12, %v406_v23  ;;  %v332_v23 = vld [vmem:[%s1738_s1 + $0x78] sm:$0xff] }
  0xb1   : > { %601 = vmatpush.msra.mxu1 %v332_v23  ;;  %1016 = vmatpush.msra.mxu2 %v332_v23 }
  0xb2   : > { %427 = vmin.xlane.f32.xlu2 %v417_v24  ;;  %1017 = vmatpush.msrb.mxu3 %v332_v23 }
  0xb5   : > { %v389_v25 = vpop.f32.mrf.mxu0 }
  0xb6   : > { %v407_v26 = vmul.f32 2.0, %v389_v25 }
  0xb8   : > { %v418_v27 = vsub.f32 %v1103_v12, %v407_v26  ;;  %v330_v26 = vld [vmem:[%s1738_s1 + $0x68] sm:$0xff] }
  0xba   : > { %429 = vmin.xlane.f32.xlu0 %v418_v27 }
  0xbd   : > { %v392_v28 = vpop.f32.mrf.mxu0 }
  0xbe   : > { %v408_v29 = vmul.f32 2.0, %v392_v28 }
  0xc0   : > { %v419_v31 = vsub.f32 %v1103_v12, %v408_v29 }
  0xc2   : > { %431 = vmin.xlane.f32.xlu1 %v419_v31 }
  0xc5   : > { %v395_v33 = vpop.f32.mrf.mxu0 }
  0xc6   : > { %v409_v34 = vmul.f32 2.0, %v395_v33 }
  0xc8   : > { %v420_v36 = vsub.f32 %v1103_v12, %v409_v34  ;;  %v326_v34 = vld [vmem:[%s1738_s1 + $0x48] sm:$0xff] }
  0xca   : > { %437 = vmin.xlane.f32.xlu1 %v422_v35  ;;  %433 = vmin.xlane.f32.xlu0 %v420_v36 }
 0x115   : > { %v424_v39 = vpop.xlane.xlu0 %423 }
 0x116   : > { %vm441_vm1 = vcmp.eq.f32.partialorder %v415_v15, %v424_v39 }
 0x117   : > { %v449_v40 = vsel %vm441_vm1, %v1379_v38, 128 }
 0x118   : > { %v458_v41 = vshra.s32 %v449_v40, 16  ;;  %v457_v15 = vand.u32 65535, %v449_v40  ;;  %v324_v40 = vld [vmem:[%s1738_s1 + $0x38] sm:$0xff] }
 0x11a   : > { %v460_v42 = vcvt.s32.f32 %v458_v41  ;;  %v459_v17 = vcvt.s32.f32 %v457_v15  ;;  %v1513_v15 = vstv %s997_s15  ;;  %s1118_s15 = sshra.s32 %s814_s29, 4  ;;  %s1119_s15 = int_to_ptr.hbm [resolvable:$true] %s1118_s15 }
 0x11b   : > { %v436_v43 = vpop.xlane.xlu2 %435  ;;  %s1120_s17 = scalar_lea.hbm %s1119_s15, 1  ;;  %p1125_p0 = scmp.lt.s32.totalorder %s1119_s15, %s1730_s6 }
 0x11c   : > { %461 = vmin.xlane.f32.xlu2 %v460_v42  ;;  %vm447_vm5 = vcmp.eq.f32.partialorder %v421_v20, %v436_v43  ;;  %p1121_p11 = scmp.ne.s32.totalorder %s1119_s15, %s1120_s17 }
 0x11d   : > { %v426_v44 = vpop.xlane.xlu1 %425  ;;  %v1391_v56 = vsel %vm447_vm5, %v1379_v38, 128 }
 0x11e   : > { %vm442_vm2 = vcmp.eq.f32.partialorder %v416_v21, %v426_v44  ;;  %v542_v58 = vshra.s32 %v1391_v56, 16  ;;  %v541_v43 = vand.u32 65535, %v1391_v56  ;;  %p1122_p12 = pnand %p1121_p11, %p1312_p5 }
 0x11f   : > { %v450_v45 = vsel %vm442_vm2, %v1379_v38, 128 }
 0x120   : > { %v472_v46 = vshra.s32 %v450_v45, 16  ;;  %v1401_v62 = vcvt.s32.f32 %v542_v58  ;;  %v471_v19 = vand.u32 65535, %v450_v45  ;;  %v322_v45 = vld [vmem:[%s1738_s1 + $0x28] sm:$0xff]  ;;  %p1123_p13 = pneg %p1122_p12 }
 0x122   : > { %v474_v47 = vcvt.s32.f32 %v472_v46  ;;  %v473_v21 = vcvt.s32.f32 %v471_v19  ;;  %v321_v46 = vld [vmem:[%s1738_s1 + $0x20] sm:$0xff]  ;;  %v1228_v19 = vmov 0.0  }
 0x124   : > { %475 = vmin.xlane.f32.xlu1 %v474_v47 }
 0x125   : > { %v428_v48 = vpop.xlane.xlu2 %427 }
 0x126   : > { %vm443_vm3 = vcmp.eq.f32.partialorder %v417_v24, %v428_v48  ;;  %v331_v24 = vld [vmem:[%s1738_s1 + $0x70] sm:$0xff] }
 0x127   : > { %v451_v49 = vsel %vm443_vm3, %v1379_v38, 128  ;;  %602 = vmatpush.msra.mxu1 %v331_v24  ;;  %1018 = vmatpush.msra.mxu2 %v331_v24 }
 0x128   : > { %v486_v50 = vshra.s32 %v451_v49, 16  ;;  %v485_v25 = vand.u32 65535, %v451_v49  ;;  %1019 = vmatpush.msrb.mxu3 %v331_v24 }
 0x129   : > { %603 = vmatpush.msra.mxu1 %v330_v26  ;;  %1020 = vmatpush.msra.mxu2 %v330_v26 }
 0x12a   : > { %v488_v51 = vcvt.s32.f32 %v486_v50  ;;  %v487_v29 = vcvt.s32.f32 %v485_v25  ;;  %1021 = vmatpush.msrb.mxu3 %v330_v26  ;;  %v543_v50 = vcvt.s32.f32 %v541_v43 }
 0x12c   : > { %489 = vmin.xlane.f32.xlu1 %v488_v51 }
 0x12d   : > { %v430_v52 = vpop.xlane.xlu0 %429 }
 0x12e   : > { %vm444_vm4 = vcmp.eq.f32.partialorder %v418_v27, %v430_v52  ;;  %v329_v27 = vld [vmem:[%s1738_s1 + $0x60] sm:$0xff] }
 0x12f   : > { %v1385_v53 = vsel %vm444_vm4, %v1379_v38, 128  ;;  %604 = vmatpush.msra.mxu1 %v329_v27  ;;  %1022 = vmatpush.msra.mxu2 %v329_v27 }
 0x130   : > { %v500_v54 = vshra.s32 %v1385_v53, 16  ;;  %1023 = vmatpush.msrb.mxu3 %v329_v27  ;;  %v499_v33 = vand.u32 65535, %v1385_v53 }
 0x131   : > { %605 = vmatpush.msra.mxu1 %v328_v30  ;;  %1024 = vmatpush.msra.mxu2 %v328_v30 }
 0x132   : > { %v1388_v55 = vcvt.s32.f32 %v500_v54  ;;  %1025 = vmatpush.msrb.mxu3 %v328_v30  ;;  %v501_v39 = vcvt.s32.f32 %v499_v33 }
 0x133   : > { %606 = vmatpush.msra.mxu1 %v327_v32  ;;  %1026 = vmatpush.msra.mxu2 %v327_v32 }
 0x134   : > { %503 = vmin.xlane.f32.xlu0 %v1388_v55  ;;  %1027 = vmatpush.msrb.mxu3 %v327_v32 }
 0x135   : > { %v432_v57 = vpop.xlane.xlu1 %431  ;;  %607 = vmatpush.msra.mxu1 %v326_v34  ;;  %1028 = vmatpush.msra.mxu2 %v326_v34 }
 0x136   : > { %vm445_vm6 = vcmp.eq.f32.partialorder %v419_v31, %v432_v57  ;;  %1029 = vmatpush.msrb.mxu3 %v326_v34 }
 0x137   : > { %v1396_v59 = vsel %vm445_vm6, %v1379_v38, 128 }
 0x138   : > { %v514_v60 = vshra.s32 %v1396_v59, 16  ;;  %v513_v44 = vand.u32 65535, %v1396_v59 }
 0x13a   : > { %v1399_v61 = vcvt.s32.f32 %v514_v60  ;;  %v515_v49 = vcvt.s32.f32 %v513_v44 }
 0x13c   : > { %517 = vmin.xlane.f32.xlu2 %v1399_v61  ;;  %545 = vmin.xlane.f32.xlu0 %v1401_v62 }
 0x13d   : > { %v438_v63 = vpop.xlane.xlu1 %437  ;;  %v434_v0 = vpop.xlane.xlu0 %433 }
 0x13e   : > { %vm448_vm7 = vcmp.eq.f32.partialorder %v422_v35, %v438_v63  ;;  %vm446_vm8 = vcmp.eq.f32.partialorder %v420_v36, %v434_v0  ;;  %v325_v35 = vld [vmem:[%s1738_s1 + $0x40] sm:$0xff]  ;;  %v318_v63 = vld [vmem:[%s1738_s1 + $0x8] sm:$0xff] }
 0x13f   : > { %v1406_v1 = vsel %vm448_vm7, %v1379_v38, 128  ;;  %v1409_v2 = vsel %vm446_vm8, %v1379_v38, 128  ;;  %608 = vmatpush.msra.mxu1 %v325_v35  ;;  %1030 = vmatpush.msra.mxu2 %v325_v35  ;;  %v317_v0 = vld [vmem:[%s1738_s1] sm:$0xff] }
 0x140   : > { %v556_v3 = vshra.s32 %v1406_v1, 16  ;;  %v528_v12 = vshra.s32 %v1409_v2, 16  ;;  %1031 = vmatpush.msrb.mxu3 %v325_v35  ;;  %v555_v54 = vand.u32 65535, %v1406_v1 }
 0x141   : > { %609 = vmatpush.msra.mxu1 %v324_v40  ;;  %1032 = vmatpush.msra.mxu2 %v324_v40 }
 0x142   : > { %v1413_v13 = vcvt.s32.f32 %v556_v3  ;;  %v1415_v14 = vcvt.s32.f32 %v528_v12  ;;  %1033 = vmatpush.msrb.mxu3 %v324_v40  ;;  %v557_v59 = vcvt.s32.f32 %v555_v54 }
 0x144   : > { %559 = vmin.xlane.f32.xlu0 %v1413_v13  ;;  %531 = vmin.xlane.f32.xlu2 %v1415_v14 }
 0x18f   : > { %v1419_v16 = vpop.xlane.xlu2 %461 }
 0x190   : > { %vm463_vm9 = vcmp.eq.f32.partialorder %v460_v42, %v1419_v16  ;;  %v323_v42 = vld [vmem:[%s1738_s1 + $0x30] sm:$0xff]  ;;  %v468_v1 = vcvt.f32.s32 %v1419_v16 }
 0x191   : > { %v464_v18 = vsel %vm463_vm9, %v459_v17, inf  ;;  %610 = vmatpush.msra.mxu1 %v323_v42  ;;  %1034 = vmatpush.msra.mxu2 %v323_v42 }
 0x192   : > { %465 = vmin.xlane.f32.xlu1 %v464_v18  ;;  %1035 = vmatpush.msrb.mxu3 %v323_v42  ;;  %v469_v12 = vshll.u32 %v468_v1, 16 }
 0x193   : > { %611 = vmatpush.msra.mxu1 %v322_v45  ;;  %1036 = vmatpush.msra.mxu2 %v322_v45 }
 0x194   : > { %1037 = vmatpush.msrb.mxu3 %v322_v45 }
 0x195   : > { %612 = vmatpush.msra.mxu1 %v321_v46  ;;  %1038 = vmatpush.msra.mxu2 %v321_v46 }
 0x196   : > { %1039 = vmatpush.msrb.mxu3 %v321_v46 }
 0x197   : > { %v1422_v20 = vpop.xlane.xlu1 %475 }
 0x198   : > { %vm477_vm10 = vcmp.eq.f32.partialorder %v474_v47, %v1422_v20  ;;  %v482_v18 = vcvt.f32.s32 %v1422_v20 }
 0x199   : > { %v478_v22 = vsel %vm477_vm10, %v473_v21, inf }
 0x19a   : > { %479 = vmin.xlane.f32.xlu0 %v478_v22  ;;  %v1229_v22 = vmov 1.0   ;;  %v483_v20 = vshll.u32 %v482_v18, 16 }
 0x19f   : > { %v1437_v28 = vpop.xlane.xlu1 %489 }
 0x1a0   : > { %vm491_vm11 = vcmp.eq.f32.partialorder %v488_v51, %v1437_v28  ;;  %v320_v51 = vld [vmem:[%s1738_s1 + $0x18] sm:$0xff]  ;;  %v496_v26 = vcvt.f32.s32 %v1437_v28 }
 0x1a1   : > { %v492_v31 = vsel %vm491_vm11, %v487_v29, inf  ;;  %613 = vmatpush.msra.mxu1 %v320_v51  ;;  %1040 = vmatpush.msra.mxu2 %v320_v51 }
 0x1a2   : > { %493 = vmin.xlane.f32.xlu0 %v492_v31  ;;  %1041 = vmatpush.msrb.mxu3 %v320_v51  ;;  %v497_v33 = vshll.u32 %v496_v26, 16 }
 0x1a7   : > { %v1453_v36 = vpop.xlane.xlu0 %503 }
 0x1a8   : > { %vm505_vm12 = vcmp.eq.f32.partialorder %v1388_v55, %v1453_v36  ;;  %v527_v55 = vand.u32 65535, %v1409_v2  ;;  %v1507_v2 = vshrl.u32 %v439_v37, 7  ;;  %v510_v43 = vcvt.f32.s32 %v1453_v36 }
 0x1a9   : > { %v506_v41 = vsel %vm505_vm12, %v501_v39, inf }
 0x1aa   : > { %507 = vmin.xlane.f32.xlu2 %v506_v41  ;;  %v529_v58 = vcvt.s32.f32 %v527_v55  ;;  %v661_v16 = vadd.s32 %v1513_v15, %v1507_v2  ;;  %v654_v30 = vadd.s32 16, %v1507_v2  ;;  %v655_v40 = vadd.s32 24, %v1507_v2 }
 0x1ab   : > { %v511_v51 = vshll.u32 %v510_v43, 16  ;;  %v658_v18 = vadd.s32 48, %v1507_v2 }
 0x1ac   : > { %vm669_vm3 = vcmp.lt.s32.totalorder %v661_v16, 200  ;;  %v663_v41 = vadd.s32 %v1513_v15, %v654_v30  ;;  %v664_v44 = vadd.s32 %v1513_v15, %v655_v40 }
 0x1ad   : > { %v1527_v27 = vsel %vm669_vm3, 1.0, %v1228_v19 }
 0x1ae   : > { %vm671_vm7 = vcmp.lt.s32.totalorder %v663_v41, 200  ;;  %vm672_vm8 = vcmp.lt.s32.totalorder %v664_v44, 200 }
 0x1af   : > { %v1471_v47 = vpop.xlane.xlu2 %517  ;;  %v1473_v48 = vpop.xlane.xlu0 %545 }
 0x1b0   : > { %vm519_vm13 = vcmp.eq.f32.partialorder %v1399_v61, %v1471_v47  ;;  %vm547_vm14 = vcmp.eq.f32.partialorder %v1401_v62, %v1473_v48  ;;  %v319_v62 = vld [vmem:[%s1738_s1 + $0x10] sm:$0xff]  ;;  %v524_v54 = vcvt.f32.s32 %v1471_v47  ;;  %v552_v55 = vcvt.f32.s32 %v1473_v48  ;;  %s1662_s1 = scalar_lea.sflag [#allocation5], %s775_s21 }
 0x1b1   : > { %v520_v52 = vsel %vm519_vm13, %v515_v49, inf  ;;  %v548_v53 = vsel %vm547_vm14, %v543_v50, inf  ;;  %614 = vmatpush.msra.mxu1 %v319_v62  ;;  %1042 = vmatpush.msra.mxu2 %v319_v62  ;;  %v656_v49 = vadd.s32 32, %v1507_v2  ;;  %v1549_v50 = vsel %vm671_vm7, 1.0, %v1228_v19 }
 0x1b2   : > { %521 = vmin.xlane.f32.xlu1 %v520_v52  ;;  %549 = vmin.xlane.f32.xlu2 %v548_v53 }
 0x1b3   : > { %1043 = vmatpush.msrb.mxu3 %v319_v62  ;;  %615 = vmatpush.msra.mxu1 %v318_v63 }
 0x1b4   : > { %1044 = vmatpush.msra.mxu2 %v318_v63 }
 0x1b5   : > { %1045 = vmatpush.msrb.mxu3 %v318_v63  ;;  %616 = vmatpush.msra.mxu1 %v317_v0  ;;  %v525_v63 = vshll.u32 %v524_v54, 16 }
 0x1b6   : > { %1046 = vmatpush.msra.mxu2 %v317_v0 }
 0x1b7   : > { %v1484_v56 = vpop.xlane.xlu2 %531  ;;  %v1486_v57 = vpop.xlane.xlu0 %559  ;;  %1047 = vmatpush.msrb.mxu3 %v317_v0  ;;  %v553_v0 = vshll.u32 %v552_v55, 16 }
 0x1b8   : > { %vm533_vm15 = vcmp.eq.f32.partialorder %v1415_v14, %v1484_v56  ;;  %vm561_vm1 = vcmp.eq.f32.partialorder %v1413_v13, %v1486_v57  ;;  %v653_v14 = vadd.s32 8, %v1507_v2  ;;  %v538_v16 = vcvt.f32.s32 %v1484_v56 }
 0x1b9   : > { %v534_v60 = vsel %vm533_vm15, %v529_v58, inf  ;;  %v562_v61 = vsel %vm561_vm1, %v557_v59, inf  ;;  %v1555_v58 = vsel %vm672_vm8, 1.0, %v1228_v19  ;;  %v665_v59 = vadd.s32 %v1513_v15, %v656_v49 }
 0x1ba   : > { %535 = vmin.xlane.f32.xlu1 %v534_v60  ;;  %563 = vmin.xlane.f32.xlu2 %v562_v61  ;;  %v662_v37 = vadd.s32 %v1513_v15, %v653_v14 }
 0x1bb   : > { %vm673_vm10 = vcmp.lt.s32.totalorder %v665_v59, 200 }
 0x1bc   : > { %vm670_vm4 = vcmp.lt.s32.totalorder %v662_v37, 200  ;;  %v566_v37 = vcvt.f32.s32 %v1486_v57 }
 0x1bd   : > { %v1530_v29 = vsel %vm670_vm4, 1.0, %v1228_v19 }
 0x1be   : > { %v567_v26 = vshll.u32 %v566_v37, 16 }
 0x205   : > { %v466_v3 = vpop.xlane.xlu1 %465 }
 0x206   : > { %v467_v13 = vcvt.f32.s32 %v466_v3 }
 0x208   : > { %v470_v17 = vadd.s32 %v469_v12, %v467_v13  ;;  %v657_v13 = vadd.s32 40, %v1507_v2 }
 0x20a   : > { %vm569_vm2 = vcmp.eq.s32.totalorder %v1379_v38, %v470_v17 }
 0x20b   : > { %v981_v21 = vsel %vm569_vm2, 1.0, %v1228_v19  ;;  %989 = vmatmul.msk.f32.vlgmr.msra.gmra.mxu1 %vm569_vm2, %v1229_v22 }
 0x20c   : > { %593 = vst [vmem:[%s1522_s18] sm:$0xff] %v981_v21  ;;  %v743_v32 = vmul.f32 %v1527_v27, %v981_v21  ;;  %v1568_v21 = vsel %vm673_vm10, 1.0, %v1228_v19 }
 0x20d   : > { %v480_v23 = vpop.xlane.xlu0 %479 }
 0x20e   : > { %v481_v24 = vcvt.f32.s32 %v480_v23  ;;  %v659_v23 = vadd.s32 56, %v1507_v2  ;;  %v539_v2 = vshll.u32 %v538_v16, 16 }
 0x210   : > { %v484_v25 = vadd.s32 %v483_v20, %v481_v24  ;;  %v666_v20 = vadd.s32 %v1513_v15, %v657_v13 }
 0x212   : > { %vm570_vm5 = vcmp.eq.s32.totalorder %v1379_v38, %v484_v25  ;;  %v667_v25 = vadd.s32 %v1513_v15, %v658_v18  ;;  %vm674_vm13 = vcmp.lt.s32.totalorder %v666_v20, 200 }
 0x213   : > { %v982_v31 = vsel %vm570_vm5, 1.0, %v1228_v19  ;;  %990 = vmatmul.msk.f32.gmra.mxu1 %vm570_vm5, %v1229_v22  ;;  %v1584_v40 = vsel %vm674_vm13, 1.0, %v1228_v19 }
 0x214   : > { %594 = vst [vmem:[%s1522_s18 + $0x8] sm:$0xff] %v982_v31  ;;  %v744_v28 = vmul.f32 %v1530_v29, %v982_v31  ;;  %vm675_vm14 = vcmp.lt.s32.totalorder %v667_v25, 200 }
 0x215   : > { %v494_v34 = vpop.xlane.xlu0 %493 }
 0x216   : > { %v751_v35 = vadd.f32 %v744_v28, %v743_v32  ;;  %v495_v39 = vcvt.f32.s32 %v494_v34  ;;  %v668_v32 = vadd.s32 %v1513_v15, %v659_v23 }
 0x218   : > { %v498_v42 = vadd.s32 %v497_v33, %v495_v39  ;;  %vm676_vm2 = vcmp.lt.s32.totalorder %v668_v32, 200 }
 0x21a   : > { %vm571_vm6 = vcmp.eq.s32.totalorder %v1379_v38, %v498_v42  ;;  %v1004_v42 = vsel %vm675_vm14, 1.0, %v1228_v19 }
 0x21b   : > { %v983_v45 = vsel %vm571_vm6, 1.0, %v1228_v19  ;;  %991 = vmatmul.msk.f32.gmra.mxu1 %vm571_vm6, %v1229_v22 }
 0x21c   : > { %595 = vst [vmem:[%s1522_s18 + $0x10] sm:$0xff] %v983_v45  ;;  %v745_v53 = vmul.f32 %v1549_v50, %v983_v45 }
 0x21d   : > { %v508_v46 = vpop.xlane.xlu2 %507 }
 0x21e   : > { %v509_v52 = vcvt.f32.s32 %v508_v46  ;;  %v752_v62 = vadd.f32 %v751_v35, %v745_v53 }
 0x220   : > { %v512_v36 = vadd.s32 %v511_v51, %v509_v52 }
 0x222   : > { %vm572_vm9 = vcmp.eq.s32.totalorder %v1379_v38, %v512_v36 }
 0x223   : > { %v984_v60 = vsel %vm572_vm9, 1.0, %v1228_v19  ;;  %992 = vmatmul.msk.f32.vlgmr.msra.gmra.mxu2 %vm572_vm9, %v1229_v22 }
 0x224   : > { %596 = vst [vmem:[%s1522_s18 + $0x18] sm:$0xff] %v984_v60  ;;  %v746_v61 = vmul.f32 %v1555_v58, %v984_v60 }
 0x225   : > { %v522_v47 = vpop.xlane.xlu1 %521  ;;  %v550_v1 = vpop.xlane.xlu2 %549 }
 0x226   : > { %v523_v48 = vcvt.f32.s32 %v522_v47  ;;  %v551_v3 = vcvt.f32.s32 %v550_v1  ;;  %v753_v12 = vadd.f32 %v752_v62, %v746_v61 }
 0x228   : > { %v526_v14 = vadd.s32 %v525_v63, %v523_v48  ;;  %v554_v17 = vadd.s32 %v553_v0, %v551_v3 }
 0x22a   : > { %vm573_vm11 = vcmp.eq.s32.totalorder %v1379_v38, %v526_v14  ;;  %vm575_vm12 = vcmp.eq.s32.totalorder %v1379_v38, %v554_v17 }
 0x22b   : > { %v985_v24 = vsel %vm573_vm11, 1.0, %v1228_v19  ;;  %993 = vmatmul.msk.f32.gmra.mxu2 %vm573_vm11, %v1229_v22  ;;  %v987_v56 = vsel %vm575_vm12, 1.0, %v1228_v19  ;;  %995 = vmatmul.msk.f32.vlgmr.msrb.gmra.mxu3 %vm575_vm12, %v1229_v22 }
 0x22c   : > { %597 = vst [vmem:[%s1522_s18 + $0x20] sm:$0xff] %v985_v24  ;;  %v747_v57 = vmul.f32 %v1568_v21, %v985_v24  ;;  %v749_v44 = vmul.f32 %v1004_v42, %v987_v56 }
 0x22d   : > { %599 = vst [vmem:[%s1522_s18 + $0x30] sm:$0xff] %v987_v56  ;;  %v536_v30 = vpop.xlane.xlu1 %535  ;;  %v564_v31 = vpop.xlane.xlu2 %563 }
 0x22e   : > { %v537_v28 = vcvt.f32.s32 %v536_v30  ;;  %v565_v33 = vcvt.f32.s32 %v564_v31  ;;  %v754_v34 = vadd.f32 %v753_v12, %v747_v57 }
 0x230   : > { %v540_v35 = vadd.s32 %v539_v2, %v537_v28  ;;  %v568_v39 = vadd.s32 %v567_v26, %v565_v33 }
 0x232   : > { %vm574_vm15 = vcmp.eq.s32.totalorder %v1379_v38, %v540_v35  ;;  %vm576_vm1 = vcmp.eq.s32.totalorder %v1379_v38, %v568_v39  ;;  %v1005_v38 = vsel %vm676_vm2, 1.0, %v1228_v19 }
 0x233   : > { %v986_v41 = vsel %vm574_vm15, 1.0, %v1228_v19  ;;  %994 = vmatmul.msk.f32.gmra.mxu2 %vm574_vm15, %v1229_v22  ;;  %v988_v15 = vsel %vm576_vm1, 1.0, %v1228_v19  ;;  %996 = vmatmul.msk.f32.gmra.mxu3 %vm576_vm1, %v1229_v22 }
 0x234   : > { %598 = vst [vmem:[%s1522_s18 + $0x28] sm:$0xff] %v986_v41  ;;  %v748_v43 = vmul.f32 %v1584_v40, %v986_v41  ;;  %v750_v46 = vmul.f32 %v1005_v38, %v988_v15 }
 0x235   : > { %600 = vst [vmem:[%s1522_s18 + $0x38] sm:$0xff] %v988_v15 }
 0x236   : > { %v755_v45 = vadd.f32 %v754_v34, %v748_v43 }
 0x238   : > { %v756_v49 = vadd.f32 %v755_v45, %v749_v44 }
 0x23a   : > { %v757_v51 = vadd.f32 %v756_v49, %v750_v46 }
 0x23c   : > { %v758_v52 = vrot.slane %v757_v51, 4 }
 0x23e   : > { %v759_v36 = vadd.f32 %v758_v52, %v757_v51 }
 0x240   : > { %v760_v53 = vrot.slane %v759_v36, 2 }
 0x242   : > { %v761_v22 = vadd.f32 %v760_v53, %v759_v36 }
 0x244   : > { %v762_v54 = vrot.slane %v761_v22, 1 }
 0x246   : > { %v763_v55 = vadd.f32 %v762_v54, %v761_v22 }
 0x248   : > { %764 = vst [vmem:[%s289_s19] sm:$0x1] %v763_v55 }
 0x288   : > { %v618_v19 = vpop.f32.mrf.mxu1 }
 0x289   : > { %642 = vst.msk [vmem:[%s1605_s23] sm:$0xff] %vm338_vm0, %v618_v19  ;;  %v693_v63 = vsub.f32 %v618_v19, %v1343_v4 }
 0x28b   : > { %v701_v48 = vmul.f32 %v1527_v27, %v693_v63 }
 0x28d   : > { %v709_v4 = vmul.f32 %v701_v48, %v701_v48 }
 0x28f   : > { %v717_v18 = vsel %vm338_vm0, %v709_v4, 0.0 }
 0x290   : > { %v621_v59 = vpop.f32.mrf.mxu1 }
 0x291   : > { %643 = vst.msk [vmem:[%s1605_s23 + $0x8] sm:$0xff] %vm338_vm0, %v621_v59  ;;  %v694_v62 = vsub.f32 %v621_v59, %v1351_v6 }
 0x293   : > { %v702_v47 = vmul.f32 %v1530_v29, %v694_v62 }
 0x295   : > { %v710_v14 = vmul.f32 %v702_v47, %v702_v47 }
 0x297   : > { %v718_v27 = vsel %vm338_vm0, %v710_v14, 0.0 }
 0x298   : > { %v624_v60 = vpop.f32.mrf.mxu1  ;;  %v719_v37 = vadd.f32 %v718_v27, %v717_v18 }
 0x299   : > { %644 = vst.msk [vmem:[%s1605_s23 + $0x10] sm:$0xff] %vm338_vm0, %v624_v60  ;;  %v695_v0 = vsub.f32 %v624_v60, %v1359_v8 }
 0x29b   : > { %v703_v3 = vmul.f32 %v1549_v50, %v695_v0 }
 0x29d   : > { %v711_v8 = vmul.f32 %v703_v3, %v703_v3 }
 0x2a6   : > { %v627_v61 = vpop.f32.mrf.mxu2 }
 0x2a7   : > { %645 = vst.msk [vmem:[%s1605_s23 + $0x18] sm:$0xff] %vm338_vm0, %v627_v61  ;;  %v696_v1 = vsub.f32 %v627_v61, %v1363_v9 }
 0x2a9   : > { %v704_v17 = vmul.f32 %v1555_v58, %v696_v1  ;;  %v720_v58 = vsel %vm338_vm0, %v711_v8, 0.0 }
 0x2aa   : > { %v721_v57 = vadd.f32 %v720_v58, %v719_v37 }
 0x2ab   : > { %v712_v29 = vmul.f32 %v704_v17, %v704_v17 }
 0x2ad   : > { %v722_v20 = vsel %vm338_vm0, %v712_v29, 0.0 }
 0x2ae   : > { %v630_v12 = vpop.f32.mrf.mxu2  ;;  %v636_v13 = vpop.f32.mrf.mxu3  ;;  %v723_v26 = vadd.f32 %v722_v20, %v721_v57 }
 0x2af   : > { %646 = vst.msk [vmem:[%s1605_s23 + $0x20] sm:$0xff] %vm338_vm0, %v630_v12  ;;  %v697_v6 = vsub.f32 %v630_v12, %v1367_v10  ;;  %v699_v50 = vsub.f32 %v636_v13, %v1345_v5 }
 0x2b0   : > { %648 = vst.msk [vmem:[%s1605_s23 + $0x30] sm:$0xff] %vm338_vm0, %v636_v13 }
 0x2b1   : > { %v705_v9 = vmul.f32 %v1568_v21, %v697_v6  ;;  %v707_v24 = vmul.f32 %v1004_v42, %v699_v50 }
 0x2b3   : > { %v713_v16 = vmul.f32 %v705_v9, %v705_v9  ;;  %v715_v30 = vmul.f32 %v707_v24, %v707_v24 }
 0x2b5   : > { %v724_v5 = vsel %vm338_vm0, %v713_v16, 0.0  ;;  %v728_v33 = vsel %vm338_vm0, %v715_v30, 0.0 }
 0x2b6   : > { %v633_v10 = vpop.f32.mrf.mxu2  ;;  %v639_v23 = vpop.f32.mrf.mxu3  ;;  %v725_v32 = vadd.f32 %v724_v5, %v723_v26 }
 0x2b7   : > { %647 = vst.msk [vmem:[%s1605_s23 + $0x28] sm:$0xff] %vm338_vm0, %v633_v10  ;;  %v698_v21 = vsub.f32 %v633_v10, %v1371_v11  ;;  %v700_v56 = vsub.f32 %v639_v23, %v1353_v7 }
 0x2b8   : > { %649 = vst.msk [vmem:[%s1605_s23 + $0x38] sm:$0xff] %vm338_vm0, %v639_v23  ;;  %s811_s23 = sshll.u32 %s289_s19, 4  ;;  %s1124_s19 = scalar_lea.hbm %s1730_s6, 4  ;;  %s812_s23 = int_to_ptr.vmem [resolvable:$true] %s811_s23 }
 0x2b9   : > { %v706_v25 = vmul.f32 %v1584_v40, %v698_v21  ;;  %v708_v2 = vmul.f32 %v1005_v38, %v700_v56  ;;  %p1126_p1 = scmp.lt.s32.totalorder %s1124_s19, %s1120_s17 }
 0x2bb   : > { %v714_v31 = vmul.f32 %v706_v25, %v706_v25  ;;  %v716_v7 = vmul.f32 %v708_v2, %v708_v2  ;;  %p1127_p2 = por %p1126_p1, %p1125_p0 }
 0x2bd   : > { %v726_v11 = vsel %vm338_vm0, %v714_v31, 0.0  ;;  %v730_v35 = vsel %vm338_vm0, %v716_v7, 0.0  ;;  %p1128_p3 = pnand %p1127_p2, %p1123_p13 }
 0x2be   : > { %v727_v28 = vadd.f32 %v726_v11, %v725_v32 }
 0x2c0   : > { %v729_v34 = vadd.f32 %v728_v33, %v727_v28 }
 0x2c2   : > { %v731_v39 = vadd.f32 %v730_v35, %v729_v34 }
 0x2c4   : > { %732 = vadd.xlane.f32.xlu0 %v731_v39 }
 0x2c5   : > { %1131 = shalt.err (!%p1128_p3)
}
 0x2c6   : > { %1051 = dma.vmem_to_hbm [thread:$0]  (%p1312_p5), %s812_s23, 16, %s814_s29, %s1662_s1  }
 0x2c7   : > { %s771_s18 = scalar_lea.sflag [#allocation3], %s1503_s14  ;;  %s1146_s20 = sshra.s32 %s1657_s9, 4  ;;  %s1147_s20 = int_to_ptr.hbm [resolvable:$true] %s1146_s20 }
 0x2c8   : > { %s1148_s21 = scalar_lea.hbm %s1147_s20, 64  ;;  %s1152_s22 = scalar_lea.hbm %s1729_s5, 256 }
 0x2c9   : > { %p1149_p4 = scmp.ne.s32.totalorder %s1147_s20, %s1148_s21  ;;  %p1153_p9 = scmp.lt.s32.totalorder %s1147_s20, %s1729_s5 }
 0x2ca   : > { %p1154_p10 = scmp.lt.s32.totalorder %s1152_s22, %s1148_s21 }
 0x2cb   : > { %p1150_p7 = pnand %p1149_p4, %p1312_p5 }
 0x2cc   : > { %p1155_p11 = por %p1154_p10, %p1153_p9 }
 0x2cd   : > { %p1151_p8 = pneg %p1150_p7 }
 0x2cf   : > { %p1156_p12 = pnand %p1155_p11, %p1151_p8 }
 0x2d1   : > { %1159 = shalt.err (!%p1156_p12)
}
 0x2d2   : > { %s1230_s29 = smov 128   ;;  %s1231_s23 = smov 8  }
 0x2d3   : > { %1050 = dma.vmem_to_hbm [thread:$0]  (%p1312_p5), %s1660_s0, 1024, %s1657_s9, %s771_s18, %s1230_s29, %s1230_s29, %s1231_s23  }
 0x2d4   : > { %s822_s20 = scalar_lea.hbm %s1731_s7, %s1293_s28  ;;  %s295_s21 = scalar_lea.vmem [#allocation6], %s1503_s14 }
 0x2d5   : > { %s824_s15 = sshll.u32 %s295_s21, 4  ;;  %s826_s17 = sshll.u32 %s822_s20, 4  ;;  %s825_s15 = int_to_ptr.vmem [resolvable:$true] %s824_s15  ;;  %s827_s17 = int_to_ptr.hbm [resolvable:$true] %s826_s17 }
 0x2d6   : > { %s1174_s0 = sshra.s32 %s827_s17, 4  ;;  %s1180_s19 = scalar_lea.hbm %s1731_s7, 4  ;;  %s1175_s0 = int_to_ptr.hbm [resolvable:$true] %s1174_s0 }
 0x2d7   : > { %s1176_s9 = scalar_lea.hbm %s1175_s0, 1  ;;  %p1181_p2 = scmp.lt.s32.totalorder %s1175_s0, %s1731_s7 }
 0x2d8   : > { %p1177_p13 = scmp.ne.s32.totalorder %s1175_s0, %s1176_s9  ;;  %p1182_p3 = scmp.lt.s32.totalorder %s1180_s19, %s1176_s9 }
 0x2da   : > { %p1178_p0 = pnand %p1177_p13, %p1312_p5  ;;  %p1183_p4 = por %p1182_p3, %p1181_p2 }
 0x2dc   : > { %p1179_p1 = pneg %p1178_p0 }
 0x2de   : > { %p1184_p7 = pnand %p1183_p4, %p1179_p1 }
 0x337   : > { %v733_v40 = vpop.xlane.xlu0 %732 }
 0x338   : > { %v734_v41 = vrot.slane %v733_v40, 4 }
 0x33a   : > { %v735_v15 = vadd.f32 %v734_v41, %v733_v40 }
 0x33c   : > { %v736_v42 = vrot.slane %v735_v15, 2 }
 0x33e   : > { %v737_v43 = vadd.f32 %v736_v42, %v735_v15 }
 0x340   : > { %v738_v38 = vrot.slane %v737_v43, 1 }
 0x342   : > { %v739_v44 = vadd.f32 %v738_v38, %v737_v43 }
 0x344   : > { %1048 = vpush %v739_v44 }
 0x375   : > { %s1049_s22 = spop %1048 }
 0x376   : > { %v741_v45 = vstv %s1049_s22 }
 0x377   : > { %742 = vst [vmem:[%s295_s21] sm:$0x1] %v741_v45 }
 0x378   : > { %1187 = shalt.err (!%p1184_p7)
}
 0x379   : > { %1052 = dma.vmem_to_hbm [thread:$0]  (%p1312_p5), %s825_s15, 16, %s827_s17, %s1662_s1  }
 0x37a PF: > { %p1066_p8 = scmp.ge.s32.totalorder %s1226_s27, 2  ;;  %s846_s29 = sand.u32 1, %s1214_s24  }
 0x37b   : > { %s847_s23 = scalar_lea.sflag [#allocation3], %s846_s29 }
 0x37c   : > { %p1057_p9 = pnand %p1066_p8, %p1316_p6 }
 0x37e   : > { %p1058_p10 = pneg %p1057_p9 }
 0x380   : > { %1205 = dma.done.wait (%p1058_p10), %s847_s23, 1024  }
 0x381   : > { %1207 = vsyncadd (%p1058_p10), %s847_s23, 4294966272  ;;  %s1739_s13 = sadd.s32 4294967294, %s1226_s27  }
 0x382   : > { %s856_s16 = sand.u32 1, %s1739_s13  }
 0x383   : > { %s857_s20 = scalar_lea.sflag [#allocation5], %s856_s16 }
 0x384   : > { %1209 = dma.done.wait (%p1058_p10), %s857_s20, 32  }
 0x385   : > { %1211 = vsyncadd (%p1058_p10), %s857_s20, 4294967264  ;;  %p21_p5 = scmp.ge.s32.totalorder %s1297_s30, 6   ;;  %s1740_s24 = smov %s1218_s25 }
 0x386   : > { %s1741_s25 = smov %s1222_s26  ;;  %s1742_s26 = smov %s1310_s10 }
 0x387   : > { %s1743_s27 = smov %s1297_s30  ;;  %23 = sbr.rel (!%p21_p5) target bundleno = 8 (0x8), region = 115 }
 0x38c   :  { %871 = vsyncpa [#allocation3], 1 }
 0x38d   :  { %873 = vsyncpa [#allocation3 + $0x1], 1 }
 0x38e   :  { %874 = vsyncpa [#allocation5], 1 }
 0x38f   :  { %876 = vsyncpa [#allocation5 + $0x1], 1 }

</bundles_post_ra>
